<compile_context>
chip_gen: v5e
topology: v5e:2x2
jax: 0.10.0
libtpu: 0.0.40
codegen_flags: <defaults>
</compile_context>

<pallas_src>
import functools

import jax
import jax.numpy as jnp
from jax.experimental import pallas as pl
from jax.experimental.pallas import tpu as pltpu


def _scsnet_init_kernel(x_ref, wlane_ref, blane_ref, o_ref, *,
                        c_in, bs, w, w_strip, x_dtype):
    """Fused 1x1 conv + depth-to-space for one (batch, row-tile) block.

    x_ref:     (1, C_in, TH, W)      input rows (NCHW slice)
    wlane_ref: (C_in*bs, W*bs)       wlane[c*bs+i, w*bs+j] = weight[i*bs+j, c]
    blane_ref: (bs, W*bs)            blane[i, w*bs+j]      = bias[i*bs+j]
    o_ref:     (1, TH, bs*W*bs)      o[h, i*W*bs + w*bs + j] = y[i*bs+j, h, w]
    """
    w_bs = w * bs

    # Strip-mine W so the one-hot lane-expand matmul stays O(W*strip) and the
    # per-strip intermediates stay small (vreg-friendly).
    for s0 in range(0, w, w_strip):
        sw = min(w_strip, w - s0)
        swb = sw * bs

        # One-hot lane-upsample matrix built on-chip (no HBM/VMEM operand):
        #   r[wl, wl*bs + j] = 1, 0 elsewhere.  Exact in bf16/f32.
        rows = jax.lax.broadcasted_iota(jnp.int32, (sw, swb), 0)
        cols = jax.lax.broadcasted_iota(jnp.int32, (sw, swb), 1)
        d = cols - rows * bs
        r = ((d >= 0) & (d < bs)).astype(x_dtype)

        # Lane-expand each input channel once for this strip:
        #   xr[c][h, wl*bs + j] = x[c, h, s0 + wl]
        # (each output lane has exactly one contributing term -> exact).
        xr = [
            jnp.dot(x_ref[0, c, :, s0:s0 + sw], r,
                    preferred_element_type=jnp.float32)
            for c in range(c_in)
        ]

        lo, hi = s0 * bs, (s0 + sw) * bs
        for i in range(bs):
            # Conv for output channels {i*bs + j : j}, already lane-interleaved:
            #   acc[h, w*bs+j] = bias[i*bs+j] + sum_c x[c,h,w] * weight[i*bs+j, c]
            acc = blane_ref[i:i + 1, lo:hi]                 # (1, swb) row-bcast
            for c in range(c_in):
                acc = acc + xr[c] * wlane_ref[c * bs + i:c * bs + i + 1, lo:hi]
            # Direct (row-local) store; the wrapper reshape turns the lane
            # offset i*W*bs into output row h*bs + i.
            o_ref[0, :, i * w_bs + lo:i * w_bs + hi] = acc.astype(x_dtype)


def _pick_tile_h(H, W, C_in, bs, B):
    """Row-tile size: fit comfortably in scoped VMEM, keep >=2 grid steps."""
    # f32 bytes of VMEM per image row: double-buffered x & out blocks plus
    # per-strip intermediates (upper bound taken at full W).
    bytes_per_row = 4 * (2 * C_in * W + 2 * bs * bs * W + (C_in + 1) * W * bs)
    budget = 6 * 1024 * 1024          # well inside v5e's 16 MiB scoped default
    th = max(8, min(budget // max(bytes_per_row, 1), 32, H))
    if th < H:
        th = max(8, (th // 8) * 8)
    else:
        th = H
    # v7x has 2 TensorCores: make sure the (parallel) grid has >= 2 steps.
    if B * pl.cdiv(H, th) < 2 and H > 8:
        th = max(8, ((pl.cdiv(H, 2) + 7) // 8) * 8)
    return th


def scsnet_init_forward(x_nchw, weight_oihw, bias, block_size, *, tile_h=None):
    """SCSNetInit forward.

    x_nchw:      (B, C_in, H, W)
    weight_oihw: (bs*bs, C_in, 1, 1)
    bias:        (bs*bs,)
    returns:     (B, 1, H*bs, W*bs)
    """
    B, C_in, H, W = x_nchw.shape
    bs = block_size
    C_out = weight_oihw.shape[0]
    assert C_out == bs * bs

    if tile_h is None:
        tile_h = _pick_tile_h(H, W, C_in, bs, B)
    tile_h = min(tile_h, H)
    if tile_h < H:
        tile_h = max(8, (tile_h // 8) * 8)
    grid_h = pl.cdiv(H, tile_h)

    # Weight-dependent lane-tiled operands (tiny; everything weight-independent
    # is generated inside the kernel).
    w2 = weight_oihw.reshape(C_out, C_in).astype(jnp.float32)   # (bs*bs, C_in)
    # wlane[c*bs + i, w*bs + j] = w2[i*bs + j, c]
    w_r = jnp.transpose(w2.reshape(bs, bs, C_in), (2, 0, 1))    # (C_in, i, j)
    wlane = jnp.tile(w_r[:, :, None, :], (1, 1, W, 1)).reshape(C_in * bs, W * bs)
    # blane[i, w*bs + j] = bias[i*bs + j]
    blane = jnp.tile(bias.astype(jnp.float32).reshape(bs, 1, bs),
                     (1, W, 1)).reshape(bs, W * bs)

    kernel = functools.partial(_scsnet_init_kernel, c_in=C_in, bs=bs, w=W,
                               w_strip=min(W, 128), x_dtype=x_nchw.dtype)

    out3 = pl.pallas_call(
        kernel,
        out_shape=jax.ShapeDtypeStruct((B, H, bs * bs * W), x_nchw.dtype),
        grid_spec=pltpu.PrefetchScalarGridSpec(
            num_scalar_prefetch=0,
            grid=(B, grid_h),
            in_specs=[
                pl.BlockSpec((1, C_in, tile_h, W), lambda b, t: (b, 0, t, 0)),
                pl.BlockSpec((C_in * bs, W * bs), lambda b, t: (0, 0)),
                pl.BlockSpec((bs, W * bs), lambda b, t: (0, 0)),
            ],
            out_specs=pl.BlockSpec((1, tile_h, bs * bs * W),
                                   lambda b, t: (b, t, 0)),
        ),
        compiler_params=pltpu.CompilerParams(
            dimension_semantics=("parallel", "parallel")),
    )(x_nchw, wlane, blane)

    # Contiguous (free) reshape:
    #   (B, H, bs*W*bs)[b, h, i*W*bs + w*bs + j] == (B, 1, H*bs, W*bs)[b, 0, h*bs+i, w*bs+j]
    return out3.reshape(B, 1, H * bs, W * bs)


def _reference(x, weight, bias, bs):
    B, C_in, H, W = x.shape
    conv = (jnp.einsum("bchw,oc->bohw", x, weight[:, :, 0, 0],
                       precision="highest")
            + bias[None, :, None, None])
    ref = conv.transpose(0, 2, 3, 1).reshape(B, H, W, bs, bs)
    ref = ref.transpose(0, 1, 3, 2, 4).reshape(B, 1, H * bs, W * bs)
    return ref


if __name__ == "__main__":
    # Small shapes consistent with the module.
    B, C_in, H, W = 2, 4, 16, 16
    block_size = 4
    C_out = block_size ** 2

    key = jax.random.PRNGKey(0)
    kx, kw, kb = jax.random.split(key, 3)

    x = jax.random.normal(kx, (B, C_in, H, W), dtype=jnp.float32)
    # Deterministic synthetic parameters (same shapes as nn.Conv2d(C_in, bs**2, 1)).
    weight = jax.random.normal(kw, (C_out, C_in, 1, 1), dtype=jnp.float32) * 0.1
    bias = jax.random.normal(kb, (C_out,), dtype=jnp.float32) * 0.1

    out = scsnet_init_forward(x, weight, bias, block_size, tile_h=8)
    out = jax.block_until_ready(out)

    ref = _reference(x, weight, bias, block_size)
    assert out.shape == (B, 1, H * block_size, W * block_size)
    assert jnp.allclose(out, ref, atol=1e-5, rtol=1e-5), (
        float(jnp.max(jnp.abs(out - ref))))

    # Ragged-H check (partial last row tile): row-local writes make the padded
    # rows harmless; Pallas masks them on writeback.
    Hr = 12
    xr = jax.random.normal(key, (1, C_in, Hr, W), dtype=jnp.float32)
    outr = jax.block_until_ready(
        scsnet_init_forward(xr, weight, bias, block_size, tile_h=8))
    refr = _reference(xr, weight, bias, block_size)
    assert jnp.allclose(outr, refr, atol=1e-5, rtol=1e-5), (
        float(jnp.max(jnp.abs(outr - refr))))

    print("KERNEL_OK")
</pallas_src>

<mosaic_0001>
module attributes {stable_mosaic.version = 11 : i64} {
  func.func @_scsnet_init_kernel(%arg0: i32, %arg1: i32, %arg2: memref<1x4x8x16xf32, #tpu.memory_space<vmem>>, %arg3: memref<16x64xf32, #tpu.memory_space<vmem>>, %arg4: memref<4x64xf32, #tpu.memory_space<vmem>>, %arg5: memref<1x8x256xf32, #tpu.memory_space<vmem>>) attributes {dimension_semantics = [#tpu.dimension_semantics<parallel>, #tpu.dimension_semantics<parallel>], iteration_bounds = array<i64: 2, 2>, scalar_prefetch = 0 : i64, scratch_operands = 0 : i64, tpu.core_type = #tpu.core_type<tc>, window_params = [{transform_indices = @transform_0, window_bounds = array<i64: 1, 4, 8, 16>}, {pipeline_mode = #tpu.pipeline_mode<synchronous>, transform_indices = @transform_1, window_bounds = array<i64: 16, 64>}, {pipeline_mode = #tpu.pipeline_mode<synchronous>, transform_indices = @transform_2, window_bounds = array<i64: 4, 64>}, {transform_indices = @transform_3, window_bounds = array<i64: 1, 8, 256>}]} {
    %0 = tpu.iota {dimensions = array<i32: 0>} : vector<16x64xi32>
    %1 = tpu.iota {dimensions = array<i32: 1>} : vector<16x64xi32>
    %c4_i32 = arith.constant 4 : i32
    %2 = vector.broadcast %c4_i32 : i32 to vector<16x64xi32>
    %3 = arith.muli %0, %2 : vector<16x64xi32>
    %4 = arith.subi %1, %3 : vector<16x64xi32>
    %c0_i32 = arith.constant 0 : i32
    %5 = vector.broadcast %c0_i32 : i32 to vector<16x64xi32>
    %6 = arith.cmpi sge, %4, %5 : vector<16x64xi32>
    %c4_i32_0 = arith.constant 4 : i32
    %7 = vector.broadcast %c4_i32_0 : i32 to vector<16x64xi32>
    %8 = arith.cmpi slt, %4, %7 : vector<16x64xi32>
    %9 = arith.andi %6, %8 : vector<16x64xi1>
    %10 = arith.extui %9 : vector<16x64xi1> to vector<16x64xi32>
    %11 = arith.sitofp %10 : vector<16x64xi32> to vector<16x64xf32>
    %c0 = arith.constant 0 : index
    %c0_1 = arith.constant 0 : index
    %c0_2 = arith.constant 0 : index
    %c0_3 = arith.constant 0 : index
    %12 = vector.load %arg2[%c0, %c0_1, %c0_2, %c0_3] : memref<1x4x8x16xf32, #tpu.memory_space<vmem>>, vector<1x1x8x16xf32>
    %13 = vector.shape_cast %12 : vector<1x1x8x16xf32> to vector<8x16xf32>
    %cst = arith.constant dense<0.000000e+00> : vector<8x64xf32>
    %14 = tpu.matmul %13, %11, %cst {dimension_numbers = #tpu.dot_dimension_numbers<[1], [0], [0], [1], [0, 0, 1, 1], [], []>} : vector<8x16xf32>, vector<16x64xf32>, vector<8x64xf32> -> vector<8x64xf32>
    %c0_4 = arith.constant 0 : index
    %c1 = arith.constant 1 : index
    %c0_5 = arith.constant 0 : index
    %c0_6 = arith.constant 0 : index
    %15 = vector.load %arg2[%c0_4, %c1, %c0_5, %c0_6] : memref<1x4x8x16xf32, #tpu.memory_space<vmem>>, vector<1x1x8x16xf32>
    %16 = vector.shape_cast %15 : vector<1x1x8x16xf32> to vector<8x16xf32>
    %cst_7 = arith.constant dense<0.000000e+00> : vector<8x64xf32>
    %17 = tpu.matmul %16, %11, %cst_7 {dimension_numbers = #tpu.dot_dimension_numbers<[1], [0], [0], [1], [0, 0, 1, 1], [], []>} : vector<8x16xf32>, vector<16x64xf32>, vector<8x64xf32> -> vector<8x64xf32>
    %c0_8 = arith.constant 0 : index
    %c2 = arith.constant 2 : index
    %c0_9 = arith.constant 0 : index
    %c0_10 = arith.constant 0 : index
    %18 = vector.load %arg2[%c0_8, %c2, %c0_9, %c0_10] : memref<1x4x8x16xf32, #tpu.memory_space<vmem>>, vector<1x1x8x16xf32>
    %19 = vector.shape_cast %18 : vector<1x1x8x16xf32> to vector<8x16xf32>
    %cst_11 = arith.constant dense<0.000000e+00> : vector<8x64xf32>
    %20 = tpu.matmul %19, %11, %cst_11 {dimension_numbers = #tpu.dot_dimension_numbers<[1], [0], [0], [1], [0, 0, 1, 1], [], []>} : vector<8x16xf32>, vector<16x64xf32>, vector<8x64xf32> -> vector<8x64xf32>
    %c0_12 = arith.constant 0 : index
    %c3 = arith.constant 3 : index
    %c0_13 = arith.constant 0 : index
    %c0_14 = arith.constant 0 : index
    %21 = vector.load %arg2[%c0_12, %c3, %c0_13, %c0_14] : memref<1x4x8x16xf32, #tpu.memory_space<vmem>>, vector<1x1x8x16xf32>
    %22 = vector.shape_cast %21 : vector<1x1x8x16xf32> to vector<8x16xf32>
    %cst_15 = arith.constant dense<0.000000e+00> : vector<8x64xf32>
    %23 = tpu.matmul %22, %11, %cst_15 {dimension_numbers = #tpu.dot_dimension_numbers<[1], [0], [0], [1], [0, 0, 1, 1], [], []>} : vector<8x16xf32>, vector<16x64xf32>, vector<8x64xf32> -> vector<8x64xf32>
    %c0_16 = arith.constant 0 : index
    %c0_17 = arith.constant 0 : index
    %24 = vector.load %arg4[%c0_16, %c0_17] : memref<4x64xf32, #tpu.memory_space<vmem>>, vector<1x64xf32>
    %c0_18 = arith.constant 0 : index
    %c0_19 = arith.constant 0 : index
    %25 = vector.load %arg3[%c0_18, %c0_19] : memref<16x64xf32, #tpu.memory_space<vmem>>, vector<1x64xf32>
    %26 = vector.broadcast %25 : vector<1x64xf32> to vector<8x64xf32>
    %27 = arith.mulf %14, %26 : vector<8x64xf32>
    %28 = vector.broadcast %24 : vector<1x64xf32> to vector<8x64xf32>
    %29 = arith.addf %28, %27 : vector<8x64xf32>
    %c4 = arith.constant 4 : index
    %c0_20 = arith.constant 0 : index
    %30 = vector.load %arg3[%c4, %c0_20] : memref<16x64xf32, #tpu.memory_space<vmem>>, vector<1x64xf32>
    %31 = vector.broadcast %30 : vector<1x64xf32> to vector<8x64xf32>
    %32 = arith.mulf %17, %31 : vector<8x64xf32>
    %33 = arith.addf %29, %32 : vector<8x64xf32>
    %c8 = arith.constant 8 : index
    %c0_21 = arith.constant 0 : index
    %34 = vector.load %arg3[%c8, %c0_21] : memref<16x64xf32, #tpu.memory_space<vmem>>, vector<1x64xf32>
    %35 = vector.broadcast %34 : vector<1x64xf32> to vector<8x64xf32>
    %36 = arith.mulf %20, %35 : vector<8x64xf32>
    %37 = arith.addf %33, %36 : vector<8x64xf32>
    %c12 = arith.constant 12 : index
    %c0_22 = arith.constant 0 : index
    %38 = vector.load %arg3[%c12, %c0_22] : memref<16x64xf32, #tpu.memory_space<vmem>>, vector<1x64xf32>
    %39 = vector.broadcast %38 : vector<1x64xf32> to vector<8x64xf32>
    %40 = arith.mulf %23, %39 : vector<8x64xf32>
    %41 = arith.addf %37, %40 : vector<8x64xf32>
    %c0_23 = arith.constant 0 : index
    %c0_24 = arith.constant 0 : index
    %c0_25 = arith.constant 0 : index
    %42 = vector.load %arg5[%c0_23, %c0_24, %c0_25] : memref<1x8x256xf32, #tpu.memory_space<vmem>>, vector<1x8x64xf32>
    %43 = vector.shape_cast %42 : vector<1x8x64xf32> to vector<8x64xf32>
    %44 = vector.shape_cast %41 : vector<8x64xf32> to vector<1x8x64xf32>
    tpu.vector_store %arg5[%c0_23, %c0_24, %c0_25], %44 {strides = array<i32>} : memref<1x8x256xf32, #tpu.memory_space<vmem>>, vector<1x8x64xf32>,
    %c1_26 = arith.constant 1 : index
    %c0_27 = arith.constant 0 : index
    %45 = vector.load %arg4[%c1_26, %c0_27] : memref<4x64xf32, #tpu.memory_space<vmem>>, vector<1x64xf32>
    %c1_28 = arith.constant 1 : index
    %c0_29 = arith.constant 0 : index
    %46 = vector.load %arg3[%c1_28, %c0_29] : memref<16x64xf32, #tpu.memory_space<vmem>>, vector<1x64xf32>
    %47 = vector.broadcast %46 : vector<1x64xf32> to vector<8x64xf32>
    %48 = arith.mulf %14, %47 : vector<8x64xf32>
    %49 = vector.broadcast %45 : vector<1x64xf32> to vector<8x64xf32>
    %50 = arith.addf %49, %48 : vector<8x64xf32>
    %c5 = arith.constant 5 : index
    %c0_30 = arith.constant 0 : index
    %51 = vector.load %arg3[%c5, %c0_30] : memref<16x64xf32, #tpu.memory_space<vmem>>, vector<1x64xf32>
    %52 = vector.broadcast %51 : vector<1x64xf32> to vector<8x64xf32>
    %53 = arith.mulf %17, %52 : vector<8x64xf32>
    %54 = arith.addf %50, %53 : vector<8x64xf32>
    %c9 = arith.constant 9 : index
    %c0_31 = arith.constant 0 : index
    %55 = vector.load %arg3[%c9, %c0_31] : memref<16x64xf32, #tpu.memory_space<vmem>>, vector<1x64xf32>
    %56 = vector.broadcast %55 : vector<1x64xf32> to vector<8x64xf32>
    %57 = arith.mulf %20, %56 : vector<8x64xf32>
    %58 = arith.addf %54, %57 : vector<8x64xf32>
    %c13 = arith.constant 13 : index
    %c0_32 = arith.constant 0 : index
    %59 = vector.load %arg3[%c13, %c0_32] : memref<16x64xf32, #tpu.memory_space<vmem>>, vector<1x64xf32>
    %60 = vector.broadcast %59 : vector<1x64xf32> to vector<8x64xf32>
    %61 = arith.mulf %23, %60 : vector<8x64xf32>
    %62 = arith.addf %58, %61 : vector<8x64xf32>
    %c0_33 = arith.constant 0 : index
    %c0_34 = arith.constant 0 : index
    %c64 = arith.constant 64 : index
    %63 = vector.load %arg5[%c0_33, %c0_34, %c64] : memref<1x8x256xf32, #tpu.memory_space<vmem>>, vector<1x8x64xf32>
    %64 = vector.shape_cast %63 : vector<1x8x64xf32> to vector<8x64xf32>
    %65 = vector.shape_cast %62 : vector<8x64xf32> to vector<1x8x64xf32>
    tpu.vector_store %arg5[%c0_33, %c0_34, %c64], %65 {strides = array<i32>} : memref<1x8x256xf32, #tpu.memory_space<vmem>>, vector<1x8x64xf32>,
    %c2_35 = arith.constant 2 : index
    %c0_36 = arith.constant 0 : index
    %66 = vector.load %arg4[%c2_35, %c0_36] : memref<4x64xf32, #tpu.memory_space<vmem>>, vector<1x64xf32>
    %c2_37 = arith.constant 2 : index
    %c0_38 = arith.constant 0 : index
    %67 = vector.load %arg3[%c2_37, %c0_38] : memref<16x64xf32, #tpu.memory_space<vmem>>, vector<1x64xf32>
    %68 = vector.broadcast %67 : vector<1x64xf32> to vector<8x64xf32>
    %69 = arith.mulf %14, %68 : vector<8x64xf32>
    %70 = vector.broadcast %66 : vector<1x64xf32> to vector<8x64xf32>
    %71 = arith.addf %70, %69 : vector<8x64xf32>
    %c6 = arith.constant 6 : index
    %c0_39 = arith.constant 0 : index
    %72 = vector.load %arg3[%c6, %c0_39] : memref<16x64xf32, #tpu.memory_space<vmem>>, vector<1x64xf32>
    %73 = vector.broadcast %72 : vector<1x64xf32> to vector<8x64xf32>
    %74 = arith.mulf %17, %73 : vector<8x64xf32>
    %75 = arith.addf %71, %74 : vector<8x64xf32>
    %c10 = arith.constant 10 : index
    %c0_40 = arith.constant 0 : index
    %76 = vector.load %arg3[%c10, %c0_40] : memref<16x64xf32, #tpu.memory_space<vmem>>, vector<1x64xf32>
    %77 = vector.broadcast %76 : vector<1x64xf32> to vector<8x64xf32>
    %78 = arith.mulf %20, %77 : vector<8x64xf32>
    %79 = arith.addf %75, %78 : vector<8x64xf32>
    %c14 = arith.constant 14 : index
    %c0_41 = arith.constant 0 : index
    %80 = vector.load %arg3[%c14, %c0_41] : memref<16x64xf32, #tpu.memory_space<vmem>>, vector<1x64xf32>
    %81 = vector.broadcast %80 : vector<1x64xf32> to vector<8x64xf32>
    %82 = arith.mulf %23, %81 : vector<8x64xf32>
    %83 = arith.addf %79, %82 : vector<8x64xf32>
    %c0_42 = arith.constant 0 : index
    %c0_43 = arith.constant 0 : index
    %c128 = arith.constant 128 : index
    %84 = vector.load %arg5[%c0_42, %c0_43, %c128] : memref<1x8x256xf32, #tpu.memory_space<vmem>>, vector<1x8x64xf32>
    %85 = vector.shape_cast %84 : vector<1x8x64xf32> to vector<8x64xf32>
    %86 = vector.shape_cast %83 : vector<8x64xf32> to vector<1x8x64xf32>
    tpu.vector_store %arg5[%c0_42, %c0_43, %c128], %86 {strides = array<i32>} : memref<1x8x256xf32, #tpu.memory_space<vmem>>, vector<1x8x64xf32>,
    %c3_44 = arith.constant 3 : index
    %c0_45 = arith.constant 0 : index
    %87 = vector.load %arg4[%c3_44, %c0_45] : memref<4x64xf32, #tpu.memory_space<vmem>>, vector<1x64xf32>
    %c3_46 = arith.constant 3 : index
    %c0_47 = arith.constant 0 : index
    %88 = vector.load %arg3[%c3_46, %c0_47] : memref<16x64xf32, #tpu.memory_space<vmem>>, vector<1x64xf32>
    %89 = vector.broadcast %88 : vector<1x64xf32> to vector<8x64xf32>
    %90 = arith.mulf %14, %89 : vector<8x64xf32>
    %91 = vector.broadcast %87 : vector<1x64xf32> to vector<8x64xf32>
    %92 = arith.addf %91, %90 : vector<8x64xf32>
    %c7 = arith.constant 7 : index
    %c0_48 = arith.constant 0 : index
    %93 = vector.load %arg3[%c7, %c0_48] : memref<16x64xf32, #tpu.memory_space<vmem>>, vector<1x64xf32>
    %94 = vector.broadcast %93 : vector<1x64xf32> to vector<8x64xf32>
    %95 = arith.mulf %17, %94 : vector<8x64xf32>
    %96 = arith.addf %92, %95 : vector<8x64xf32>
    %c11 = arith.constant 11 : index
    %c0_49 = arith.constant 0 : index
    %97 = vector.load %arg3[%c11, %c0_49] : memref<16x64xf32, #tpu.memory_space<vmem>>, vector<1x64xf32>
    %98 = vector.broadcast %97 : vector<1x64xf32> to vector<8x64xf32>
    %99 = arith.mulf %20, %98 : vector<8x64xf32>
    %100 = arith.addf %96, %99 : vector<8x64xf32>
    %c15 = arith.constant 15 : index
    %c0_50 = arith.constant 0 : index
    %101 = vector.load %arg3[%c15, %c0_50] : memref<16x64xf32, #tpu.memory_space<vmem>>, vector<1x64xf32>
    %102 = vector.broadcast %101 : vector<1x64xf32> to vector<8x64xf32>
    %103 = arith.mulf %23, %102 : vector<8x64xf32>
    %104 = arith.addf %100, %103 : vector<8x64xf32>
    %c0_51 = arith.constant 0 : index
    %c0_52 = arith.constant 0 : index
    %c192 = arith.constant 192 : index
    %105 = vector.load %arg5[%c0_51, %c0_52, %c192] : memref<1x8x256xf32, #tpu.memory_space<vmem>>, vector<1x8x64xf32>
    %106 = vector.shape_cast %105 : vector<1x8x64xf32> to vector<8x64xf32>
    %107 = vector.shape_cast %104 : vector<8x64xf32> to vector<1x8x64xf32>
    tpu.vector_store %arg5[%c0_51, %c0_52, %c192], %107 {strides = array<i32>} : memref<1x8x256xf32, #tpu.memory_space<vmem>>, vector<1x8x64xf32>,
    return
  }
  func.func @transform_0(%arg0: i32, %arg1: i32) -> (i32, i32, i32, i32) {
    %c0_i32 = arith.constant 0 : i32
    %c0_i32_0 = arith.constant 0 : i32
    %c0_i32_1 = arith.constant 0 : i32
    return %arg0, %c0_i32, %arg1, %c0_i32_0 : i32, i32, i32, i32
  }
  func.func @transform_1(%arg0: i32, %arg1: i32) -> (i32, i32) {
    %c0_i32 = arith.constant 0 : i32
    %c0_i32_0 = arith.constant 0 : i32
    %c0_i32_1 = arith.constant 0 : i32
    return %c0_i32, %c0_i32_0 : i32, i32
  }
  func.func @transform_2(%arg0: i32, %arg1: i32) -> (i32, i32) {
    %c0_i32 = arith.constant 0 : i32
    %c0_i32_0 = arith.constant 0 : i32
    %c0_i32_1 = arith.constant 0 : i32
    return %c0_i32, %c0_i32_0 : i32, i32
  }
  func.func @transform_3(%arg0: i32, %arg1: i32) -> (i32, i32, i32) {
    %c0_i32 = arith.constant 0 : i32
    %c0_i32_0 = arith.constant 0 : i32
    return %arg0, %arg1, %c0_i32 : i32, i32, i32
  }
}

</mosaic_0001>

<bundles_post_ra>
// kernel: tpu_custom_call.1
= control target key start
LH: loop header
LB: loop body
LE: loop exit
PB: predicated region body
PF: predicated region fallthrough
CT: control target
= control target key end

     0   :  { %s1148_s0 = inlined_call_operand.hbm [shape: f32[2,4,16,16], index: 0, kind: input, shape index: {}]   ;;  %s1149_s1 = inlined_call_operand.hbm [shape: f32[16,64], index: 1, kind: input, shape index: {}]   ;;  %s1150_s2 = inlined_call_operand.hbm [shape: f32[4,64], index: 2, kind: input, shape index: {}]   ;;  %s1151_s3 = inlined_call_operand.hbm [shape: f32[2,16,256], index: 3, kind: output, shape index: {}]  }
   0x1   :  { %1158 = sst [smem:[#allocation16_spill]] %s1149_s1 }
   0x2   :  { %1159 = sst [smem:[#allocation17_spill]] %s1150_s2 }
   0x3   :  { %8 = vsyncpa [#allocation3], 0 }
   0x4   :  { %10 = vsyncpa [#allocation3 + $0x1], 0 }
   0x5   :  { %11 = vsyncpa [#allocation6], 0 }
   0x6   :  { %12 = vsyncpa [#allocation4], 0 }
   0x7   :  { %14 = vsyncpa [#allocation4 + $0x1], 0  ;;  %s950_s12 = smov 0   ;;  %s952_s13 = smov 0  }
   0x8   :  { %s954_s14 = smov 0   ;;  %s956_s15 = smov 0  }
   0x9   :  { %s958_s16 = smov 0   ;;  %s960_s17 = smov 0  }
   0xa   :  { %s962_s18 = smov 0   ;;  %s964_s19 = smov 0  }
   0xb LB: > { %1160 = sst [smem:[#allocation12_spill]] %s893_s12  ;;  %s568_s20 = sadd.s32 4294967295, %s921_s19   ;;  %s921_s19 = sphi %s964_s19, %s20_s19   ;;  %s917_s18 = sphi %s962_s18, %s1187_s18   ;;  %s913_s17 = sphi %s960_s17, %s1186_s17   ;;  %s909_s16 = sphi %s958_s16, %s1185_s16   ;;  %s905_s15 = sphi %s956_s15, %s1184_s15   ;;  %s901_s14 = sphi %s954_s14, %s1183_s14   ;;  %s897_s13 = sphi %s952_s13, %s1182_s13   ;;  %s893_s12 = sphi %s950_s12, %s1181_s12  }
   0xc   : > { %s569_s21 = sadd.s32 4294967294, %s921_s19   ;;  %p54_p0 = scmp.ne.s32.totalorder %s897_s13, %s893_s12 }
   0xd   : > { %p994_p1 = scmp.eq.s32.totalorder %s568_s20, 0  ;;  %p998_p2 = scmp.eq.s32.totalorder %s568_s20, 3 }
   0xe   : > { %p128_p3 = scmp.eq.s32.totalorder %s569_s21, 3  ;;  %p570_p5 = scmp.ge.s32.totalorder %s921_s19, 1 }
   0xf   : > { %p1004_p4 = por %p994_p1, %p54_p0  ;;  %p135_p7 = scmp.lt.s32.totalorder %s921_s19, 5 }
  0x10   : > { %p1009_p6 = por %p128_p3, %p54_p0  ;;  %s1166_s1 = sld [smem:[#allocation16_spill]] }
  0x11   : > { %p1017_p8 = pnand %p570_p5, %p135_p7  ;;  %s923_s30 = smov [#allocation5]  }
  0x12   : > { %s1164_s25 = scalar_select %p1009_p6, 1, 0 }
  0x13   : > { %p617_p9 = pneg %p1017_p8  ;;  %s148_s4 = sshll.u32 %s923_s30, 4  ;;  %s149_s4 = int_to_ptr.vmem [resolvable:$true] %s148_s4 }
  0x14   : > { %1165 = sst [smem:[#allocation13_spill]] %s1164_s25  ;;  %s1152_s8 = smov 128  }
  0x15   : > { %p618_p10 = pnand %p617_p9, %p994_p1  ;;  %s1168_s2 = sld [smem:[#allocation17_spill]] }
  0x16   : > { %s146_s28 = sshll.u32 %s1166_s1, 4  ;;  %s1153_s9 = smov 8   ;;  %s147_s28 = int_to_ptr.hbm [resolvable:$true] %s146_s28 }
  0x17   : > { %620 = dma.hbm_to_vmem [thread:$0]  (!%p618_p10), %s147_s28, 256, %s149_s4, [#allocation6], %s1152_s8, %s1152_s8, %s1153_s9  }
  0x18   : > { %s926_s10 = smov [#allocation7]   ;;  %s29_s20 = sadd.s32 1, %s913_s17 }
  0x19   : > { %s163_s11 = sshll.u32 %s926_s10, 4  ;;  %s32_s21 = sadd.s32 1, %s917_s18  ;;  %s164_s11 = int_to_ptr.vmem [resolvable:$true] %s163_s11 }
  0x1a   : > { %p30_p11 = scmp.ge.s32.totalorder %s29_s20, 2  ;;  %s41_s26 = sadd.s32 1, %s901_s14 }
  0x1b   : > { %s161_s7 = sshll.u32 %s1168_s2, 4  ;;  %p48_p12 = scmp.ne.s32.totalorder %s901_s14, %s897_s13  ;;  %s162_s7 = int_to_ptr.hbm [resolvable:$true] %s161_s7 }
  0x1c   : > { %623 = dma.hbm_to_vmem [thread:$0]  (!%p618_p10), %s162_s7, 64, %s164_s11, [#allocation6]  }
  0x1d   : > { %p49_p13 = scmp.eq.s32.totalorder %s921_s19, 0  ;;  %s1189_s20 = smov (%p30_p11, %s29_s20), 0 }
  0x1e   : > { %1169 = sst [smem:[#allocation14_spill]] %s1189_s20  ;;  %s1191_s21 = smov (!%p30_p11, %s32_s21), %s917_s18 }
  0x1f   : > { %s37_s27 = ssub.s32 %s913_s17, %s1189_s20  ;;  %p1042_p0 = por %p49_p13, %p48_p12 }
  0x20   : > { %p34_p3 = scmp.ge.s32.totalorder %s1191_s21, 2  ;;  %p1048_p5 = por %p998_p2, %p48_p12 }
  0x21   : > { %p634_p7 = scmp.lt.s32.totalorder %s921_s19, 4  ;;  %s174_s4 = sand.u32 1, %s901_s14  }
  0x22   : > { %s1193_s21 = smov (%p34_p3, %s1191_s21), 0  ;;  %s574_s5 = sshll.u32 %s174_s4, 5 }
  0x23   : > { %1172 = sst [smem:[#allocation15_spill]] %s1193_s21  ;;  %s36_s6 = ssub.s32 %s917_s18, %s1193_s21 }
  0x24   : > { %s38_s7 = sor.u32 %s37_s27, %s36_s6  ;;  %s575_s10 = sshll.u32 %s917_s18, 3 }
  0x25   : > { %p39_p9 = scmp.eq.s32.totalorder %s38_s7, 0  ;;  %s182_s11 = sadd.s32 %s913_s17, %s575_s10 }
  0x26   : > { %s576_s8 = sshll.u32 %s182_s11, 3  ;;  %s178_s9 = scalar_lea.vmem [#allocation2], %s574_s5 }
  0x27   : > { %s187_s23 = sshll.u32 %s178_s9, 4  ;;  %s184_s25 = scalar_lea.hbm %s1148_s0, %s576_s8  ;;  %s188_s23 = int_to_ptr.vmem [resolvable:$true] %s187_s23 }
  0x28   : > { %s1061_s1 = scalar_select %p39_p9, %s901_s14, %s41_s26  }
  0x29   : > { %s185_s12 = sshll.u32 %s184_s25, 4  ;;  %p625_p2 = pnand %p634_p7, %p1042_p0  ;;  %s186_s12 = int_to_ptr.hbm [resolvable:$true] %s185_s12 }
  0x2a   : > { %s175_s21 = scalar_lea.sflag [#allocation3], %s174_s4  ;;  %s927_s27 = smov 256  }
  0x2b   : > { %s1173_s6 = smov 8   ;;  %s1174_s7 = smov 128  }
  0x2c   : > { %627 = dma.hbm_to_vmem [thread:$0]  (!%p625_p2), %s186_s12, 512, %s188_s23, %s175_s21, %s927_s27, %s1174_s7, %s1173_s6  }
  0x2d   : > { %199 = sbr.rel (%p1017_p8) target bundleno = 333 (0x14d), region = 32  ;;  %s1075_s9 = sand.u32 (!%p1017_p8), 1, %s897_s13  }
  0x2e   : > { %s578_s2 = sshll.u32 (!%p1017_p8), %s1075_s9, 5  ;;  %s202_s25 = scalar_lea.sflag (!%p1017_p8), [#allocation3], %s1075_s9 }
  0x2f   : > { %s205_s8 = scalar_lea.vmem (!%p1017_p8), [#allocation2], %s578_s2 }
  0x32   : > { %880 = dma.done.wait (%p1004_p4), %s202_s25, 512  }
  0x33   : > { %882 = vsyncadd (%p1004_p4), %s202_s25, 4294966784 }
  0x34   : > { %884 = dma.done.wait (%p994_p1), [#allocation6], 320  }
  0x35   : > { %886 = vsyncadd (%p994_p1), [#allocation6], 4294966976  ;;  %v239_v0 = vlaneseq  ;;  %v591_v9 = vld [vmem:[%s205_s8 + $0x10] sm:$0xff]  ;;  %vm259_vm6 = vcmask 130048   ;;  %v258_v10 = vld [vmem:[%s205_s8] sm:$0xff]  ;;  %v928_v12 = vmov 1.0  }
  0x36   : > { %v595_v11 = vld [vmem:[%s205_s8 + $0x18] sm:$0xff]  ;;  %v587_v13 = vld [vmem:[%s205_s8 + $0x8] sm:$0xff]  ;;  %v709_v14 = vld [vmem:[#allocation5] ss:$0 sm:$0xff]  ;;  %s581_s12 = sshll.u32 %s1075_s9, 4  ;;  %vm376_vm7 = vcmask 523264  }
  0x37   : > { %v240_v1 = vshrl.u32 %v239_v0, 7  ;;  %v243_v3 = vand.u32 127, %v239_v0  ;;  %v711_v15 = vld [vmem:[#allocation5 + $0x1] ss:$0 sm:$0xff]  ;;  %v713_v16 = vld [vmem:[#allocation5 + $0x2] ss:$0 sm:$0xff] }
  0x38   : > { %v710_v17 = vld [vmem:[#allocation7] ss:$0 sm:$0xff]  ;;  %v712_v18 = vld [vmem:[#allocation7 + $0x1] ss:$0 sm:$0xff]  ;;  %v714_v19 = vld [vmem:[#allocation7 + $0x2] ss:$0 sm:$0xff] }
  0x39   : > { %v241_v2 = vadd.s32 8, %v240_v1  ;;  %v244_v4 = vmul.u32 4, %v240_v1  ;;  %v715_v20 = vld [vmem:[#allocation5 + $0x3] ss:$0 sm:$0xff]  ;;  %v717_v22 = vld [vmem:[#allocation5 + $0x4] ss:$0 sm:$0xff] }
  0x3a   : > { %v718_v23 = vld [vmem:[#allocation5 + $0x5] ss:$0 sm:$0xff]  ;;  %v719_v24 = vld [vmem:[#allocation5 + $0x6] ss:$0 sm:$0xff]  ;;  %v716_v28 = vld [vmem:[#allocation7 + $0x3] ss:$0 sm:$0xff] }
  0x3b   : > { %v245_v5 = vmul.u32 4, %v241_v2  ;;  %v246_v6 = vsub.s32 %v243_v3, %v244_v4  ;;  %v721_v30 = vld [vmem:[#allocation5 + $0x8] ss:$0 sm:$0xff]  ;;  %v722_v34 = vld [vmem:[#allocation5 + $0x9] ss:$0 sm:$0xff]  ;;  %s238_s22 = scalar_lea.vmem [#allocation8], %s581_s12 }
  0x3c   : > { %v723_v35 = vld [vmem:[#allocation5 + $0xa] ss:$0 sm:$0xff]  ;;  %v725_v36 = vld [vmem:[#allocation5 + $0xc] ss:$0 sm:$0xff]  ;;  %v720_v41 = vld [vmem:[#allocation5 + $0x7] ss:$0 sm:$0xff] }
  0x3d   : > { %v247_v7 = vsub.s32 %v243_v3, %v245_v5  ;;  %vm248_vm0 = vcmp.ge.s32.totalorder %v246_v6, 0  ;;  %vm250_vm1 = vcmp.lt.s32.totalorder %v246_v6, 4  ;;  %v726_v42 = vld [vmem:[#allocation5 + $0xe] ss:$0 sm:$0xff]  ;;  %v728_v44 = vld [vmem:[#allocation5 + $0xd] ss:$0 sm:$0xff] }
  0x3e   : > { %vm1087_vm4 = vmand %vm248_vm0, %vm250_vm1  ;;  %v724_v55 = vld [vmem:[#allocation5 + $0xb] ss:$0 sm:$0xff]  ;;  %v727_v1 = vld [vmem:[#allocation5 + $0xf] ss:$0 sm:$0xff]  ;;  %s929_s24 = smov 64   ;;  %s600_s29 = sshll.u32 %s905_s15, 1 }
  0x3f   : > { %vm249_vm2 = vcmp.ge.s32.totalorder %v247_v7, 0  ;;  %vm251_vm3 = vcmp.lt.s32.totalorder %v247_v7, 4  ;;  %s601_s20 = sshll.u32 %s909_s16, 2  ;;  %vm400_vm8 = vcmask 1048064   ;;  %s460_s10 = sshll.u32 %s238_s22, 4  ;;  %s461_s10 = int_to_ptr.vmem [resolvable:$true] %s460_s10 }
  0x40   : > { %vm253_vm5 = vmand %vm249_vm2, %vm251_vm3  ;;  %s456_s21 = sadd.s32 %s601_s20, %s600_s29  ;;  %s445_s23 = scalar_lea.sflag [#allocation4], %s1075_s9 }
  0x41   : > { %592 = vmatpush.msk.msra.mxu2 %vm253_vm5, %v928_v12  ;;  %584 = vmatpush.msk.msra.mxu0 %vm253_vm5, %v928_v12  ;;  %s602_s26 = sshll.u32 %s456_s21, 3  ;;  %s839_s7 = scalar_lea.hbm %s1151_s3, 64 }
  0x42   : > { %596 = vmatpush.msk.msra.mxu3 %vm253_vm5, %v928_v12  ;;  %588 = vmatpush.msk.msra.mxu1 %vm253_vm5, %v928_v12  ;;  %s458_s5 = scalar_lea.hbm %s1151_s3, %s602_s26 }
  0x43   : > { %593 = vmatpush.msk.msra.mxu2 %vm1087_vm4, %v928_v12  ;;  %585 = vmatpush.msk.msra.mxu0 %vm1087_vm4, %v928_v12  ;;  %s462_s11 = sshll.u32 %s458_s5, 4  ;;  %s463_s11 = int_to_ptr.hbm [resolvable:$true] %s462_s11 }
  0x44   : > { %594 = vmatmul.msk.f32.vlgmr.msra.gmra.mxu2 %vm259_vm6, %v591_v9  ;;  %597 = vmatpush.msk.msra.mxu3 %vm1087_vm4, %v928_v12  ;;  %s833_s27 = sshra.s32 %s463_s11, 4  ;;  %s834_s27 = int_to_ptr.hbm [resolvable:$true] %s833_s27 }
  0x45   : > { %586 = vmatmul.msk.f32.vlgmr.msra.gmra.mxu0 %vm259_vm6, %v258_v10  ;;  %598 = vmatmul.msk.f32.vlgmr.msra.gmra.mxu3 %vm259_vm6, %v595_v11  ;;  %s835_s15 = scalar_lea.hbm %s834_s27, 16  ;;  %p840_p10 = scmp.lt.s32.totalorder %s834_s27, %s1151_s3 }
  0x46   : > { %589 = vmatpush.msk.msra.mxu1 %vm1087_vm4, %v928_v12  ;;  %p836_p1 = scmp.ne.s32.totalorder %s834_s27, %s835_s15  ;;  %p841_p11 = scmp.lt.s32.totalorder %s839_s7, %s835_s15 }
  0x47   : > { %590 = vmatmul.msk.f32.vlgmr.msra.gmra.mxu1 %vm259_vm6, %v587_v13 }
  0x48   : > { %p837_p4 = pnand %p836_p1, %p1048_p5  ;;  %p842_p12 = por %p841_p11, %p840_p10 }
  0x4a   : > { %p838_p8 = pneg %p837_p4 }
  0x4c   : > { %p843_p13 = pnand %p842_p12, %p838_p8 }
  0xc2   : > { %v280_v21 = vpop.f32.mrf.mxu0 }
  0xc3   : > { %v361_v25 = vmul.f32 %v709_v14, %v280_v21  ;;  %v381_v26 = vmul.f32 %v711_v15, %v280_v21  ;;  %v405_v27 = vmul.f32 %v713_v16, %v280_v21  ;;  %v424_v33 = vmul.f32 %v715_v20, %v280_v21 }
  0xc4   : > { %v305_v29 = vpop.f32.mrf.mxu1 }
  0xc5   : > { %v363_v31 = vadd.f32 %v710_v17, %v361_v25  ;;  %v407_v32 = vadd.f32 %v714_v19, %v405_v27  ;;  %v383_v37 = vadd.f32 %v712_v18, %v381_v26  ;;  %v366_v38 = vmul.f32 %v717_v22, %v305_v29 }
  0xc6   : > { %v386_v39 = vmul.f32 %v718_v23, %v305_v29  ;;  %v410_v40 = vmul.f32 %v719_v24, %v305_v29  ;;  %v426_v49 = vadd.f32 %v716_v28, %v424_v33  ;;  %v429_v53 = vmul.f32 %v720_v41, %v305_v29 }
  0xc7   : > { %v330_v43 = vpop.f32.mrf.mxu2  ;;  %v367_v45 = vadd.f32 %v366_v38, %v363_v31 }
  0xc8   : > { %v411_v46 = vadd.f32 %v410_v40, %v407_v32  ;;  %v370_v47 = vmul.f32 %v721_v30, %v330_v43  ;;  %v355_v48 = vpop.f32.mrf.mxu3  ;;  %v390_v50 = vmul.f32 %v722_v34, %v330_v43  ;;  %v414_v51 = vmul.f32 %v723_v35, %v330_v43 }
  0xc9   : > { %v374_v52 = vmul.f32 %v725_v36, %v355_v48  ;;  %v418_v56 = vmul.f32 %v726_v42, %v355_v48  ;;  %v387_v57 = vadd.f32 %v386_v39, %v383_v37  ;;  %v394_v59 = vmul.f32 %v728_v44, %v355_v48 }
  0xca   : > { %v371_v54 = vadd.f32 %v370_v47, %v367_v45  ;;  %v415_v58 = vadd.f32 %v414_v51, %v411_v46  ;;  %v430_v63 = vadd.f32 %v429_v53, %v426_v49  ;;  %v433_v0 = vmul.f32 %v724_v55, %v330_v43 }
  0xcb   : > { %v391_v61 = vadd.f32 %v390_v50, %v387_v57  ;;  %v437_v4 = vmul.f32 %v727_v1, %v355_v48 }
  0xcc   : > { %v375_v60 = vadd.f32 %v374_v52, %v371_v54  ;;  %v419_v62 = vadd.f32 %v418_v56, %v415_v58  ;;  %v434_v3 = vadd.f32 %v433_v0, %v430_v63 }
  0xcd   : > { %v395_v2 = vadd.f32 %v394_v59, %v391_v61 }
  0xce   : > { %377 = vst.msk [vmem:[%s238_s22] sm:$0xff] %vm376_vm7, %v375_v60  ;;  %v438_v5 = vadd.f32 %v437_v4, %v434_v3 }
  0xcf   : > { %420 = vst.msk [vmem:[%s238_s22 + $0x8] sm:$0xff] %vm376_vm7, %v419_v62  ;;  %397 = vrot.lane.b32.xlu0 %v395_v2, %s929_s24 }
  0xd7   : > { %440 = vrot.lane.b32.xlu0 %v438_v5, %s929_s24 }
 0x141   : > { %v398_v6 = vpop.permute.xlu0 %397 }
 0x142   : > { %401 = vst.msk [vmem:[%s238_s22] sm:$0xff] %vm400_vm8, %v398_v6 }
 0x149   : > { %v441_v7 = vpop.permute.xlu0 %440 }
 0x14a   : > { %443 = vst.msk [vmem:[%s238_s22 + $0x8] sm:$0xff] %vm400_vm8, %v441_v7 }
 0x14b   : > { %846 = shalt.err (!%p843_p13)
}
 0x14c   : > { %615 = dma.vmem_to_hbm [thread:$0]  (%p1048_p5), %s461_s10, 256, %s463_s11, %s445_s23  }
 0x14d PF: > { %s1177_s9 = sld [smem:[#allocation12_spill]]  ;;  %p637_p0 = scmp.ge.s32.totalorder %s921_s19, 2 }
 0x14f   : > { %p629_p3 = pnand %p637_p0, %p1009_p6 }
 0x151   : > { %p630_p7 = pneg %p629_p3 }
 0x153   : > { %s474_s12 = sand.u32 1, %s1177_s9  }
 0x154   : > { %s475_s22 = scalar_lea.sflag [#allocation4], %s474_s12 }
 0x155   : > { %888 = dma.done.wait (%p630_p7), %s475_s22, 256  }
 0x156   : > { %890 = vsyncadd (%p630_p7), %s475_s22, 4294967040  ;;  %s20_s19 = sadd.s32 1, %s921_s19   ;;  %s1179_s30 = sld [smem:[#allocation14_spill]] }
 0x157   : > { %p17_p9 = scmp.ge.s32.totalorder %s20_s19, 6   ;;  %s1180_s24 = sld [smem:[#allocation15_spill]] }
 0x158   : > { %s1181_s12 = smov %s897_s13  ;;  %s1182_s13 = smov %s901_s14 }
 0x159   : > { %s1183_s14 = smov %s1061_s1  ;;  %s1184_s15 = smov %s913_s17 }
 0x15a   : > { %s1185_s16 = smov %s917_s18  ;;  %19 = sbr.rel (!%p17_p9) target bundleno = 11 (0xb), region = 88 }
 0x15c   : > { %s1186_s17 = smov %s1179_s30 }
 0x15d   : > { %s1187_s18 = smov %s1180_s24 }
 0x15f   :  { %481 = vsyncpa [#allocation3], 1 }
 0x160   :  { %483 = vsyncpa [#allocation3 + $0x1], 1 }
 0x161   :  { %484 = vsyncpa [#allocation6], 1 }
 0x162   :  { %485 = vsyncpa [#allocation4], 1 }
 0x163   :  { %487 = vsyncpa [#allocation4 + $0x1], 1 }

</bundles_post_ra>
